<compile_context>
chip_gen: v7x
topology: tpu7x:2x2x1
jax: 0.10.0
libtpu: 0.0.40
codegen_flags: <defaults>
</compile_context>

<pallas_src>
import math

import jax
import jax.numpy as jnp
from jax.experimental import pallas as pl
from jax.experimental.pallas import tpu as pltpu


_VMEM_LIMIT_BYTES = 40 << 20  # safe on v5e/v6e (128 MiB phys) and v7x (64 MiB)


def _pe_add_kernel(x_ref, pe_ref, o_ref):
    # Compute in f32 (torch promotes half x + f32 pe buffer); pe has one fewer
    # dim than x and broadcasts over the batch-tile axis on the VPU for free.
    x = x_ref[...].astype(jnp.float32)
    pe = pe_ref[...].astype(jnp.float32)
    o_ref[...] = (x + pe).astype(o_ref.dtype)


def make_positional_encoding(d_model: int, max_len: int = 5000,
                             dtype=jnp.float32) -> jnp.ndarray:
    """Deterministically build the sinusoidal pe buffer, matching torch init."""
    position = jnp.arange(max_len, dtype=jnp.float32)[:, None]
    div_term = jnp.exp(
        jnp.arange(0, d_model, 2, dtype=jnp.float32)
        * (-math.log(10000.0) / d_model))
    angles = position * div_term
    pe = jnp.zeros((max_len, d_model), dtype=jnp.float32)
    pe = pe.at[:, 0::2].set(jnp.sin(angles))
    pe = pe.at[:, 1::2].set(jnp.cos(angles))
    return pe.astype(dtype)


def _target_block_bytes() -> int:
    """Per-buffer DMA block target.  4 MiB keeps the ~0.35 us per-grid-step
    overhead small even at v7x's 3.2 TB/s HBM; fall back to 2 MiB if the
    hardware query is unavailable."""
    try:
        cap = pltpu.get_tpu_info().vmem_capacity_bytes
        del cap  # 4 MiB blocks (x6 buffers ~ 24 MiB) fit every generation
        return 4 << 20
    except Exception:  # pragma: no cover - conservative fallback
        return 2 << 20


def _sublane(itemsize: int) -> int:
    # 8 rows/vreg for 4-byte, 16 for 2-byte, 32 for 1-byte dtypes.
    return max(8, 32 // max(1, itemsize))


def _choose_seq_tile(S: int, D: int, itemsize: int, target_bytes: int) -> int:
    sub = _sublane(itemsize)
    rows = max(sub, target_bytes // max(1, D * itemsize))
    if rows >= S:
        return S
    ts = max(sub, (rows // sub) * sub)
    # Prefer a tile that divides S evenly (avoids a masked tail tile).
    cand = ts
    for _ in range(64):
        if cand < sub:
            break
        if S % cand == 0:
            return cand
        cand -= sub
    return ts


def _ensure_two_steps(bt: int, ts: int, B: int, S: int, sub: int,
                      total_bytes: int):
    """v7x has 2 TensorCores; a (1,1) grid leaves one idle on a mem-bound
    kernel.  Only split when the problem is big enough to be worth it."""
    if pl.cdiv(S, ts) * pl.cdiv(B, bt) >= 2 or total_bytes < (1 << 20):
        return bt, ts
    if B >= 2:
        return -(-B // 2), ts
    half = -(-(-(-S // 2)) // sub) * sub  # ceil(S/2) rounded up to sublane
    if half < S:
        return bt, half
    return bt, ts


def positional_encoding_forward(x: jnp.ndarray, pe: jnp.ndarray,
                                *, donate_x: bool = False) -> jnp.ndarray:
    """x: (B, S, D); pe: (max_len, D). Returns x + pe[:S] (dropout = eval identity)."""
    B, S, D = x.shape
    max_len = pe.shape[0]
    assert S <= max_len, f"seq_len {S} exceeds max_len {max_len}"
    assert pe.shape[1] == D, f"d_model mismatch: x has {D}, pe has {pe.shape[1]}"

    item = x.dtype.itemsize
    target = _target_block_bytes()
    aliases = {0: 0} if donate_x else {}
    total_bytes = B * S * D * item

    if D % 128 == 0:
        # ---- Path A: lane-dense D; tile sequence, then batch if slab small.
        sub = _sublane(item)
        ts = _choose_seq_tile(S, D, item, target)
        bt = 1
        if ts == S:
            slab = S * D * item
            bt = min(B, max(1, target // max(1, slab)))
        bt, ts = _ensure_two_steps(bt, ts, B, S, sub, total_bytes)
        n_s = pl.cdiv(S, ts)
        n_b = pl.cdiv(B, bt)

        # Pass the whole pe buffer when its block stays sublane-aligned (no
        # per-call slice/cast copy); otherwise slice so the block spans pe's
        # full dims.
        if ts % 8 == 0 or ts == max_len:
            pe_arg = pe
        else:
            pe_arg = pe[:S, :]

        return pl.pallas_call(
            _pe_add_kernel,
            out_shape=jax.ShapeDtypeStruct((B, S, D), x.dtype),
            grid=(n_s, n_b),  # batch innermost -> pe tile re-used across batch
            in_specs=[
                pl.BlockSpec((bt, ts, D), lambda s, b: (b, s, 0)),
                pl.BlockSpec((ts, D), lambda s, b: (s, 0)),
            ],
            out_specs=pl.BlockSpec((bt, ts, D), lambda s, b: (b, s, 0)),
            input_output_aliases=aliases,
            compiler_params=pltpu.CompilerParams(
                dimension_semantics=("parallel", "parallel"),
                vmem_limit_bytes=_VMEM_LIMIT_BYTES),
        )(x, pe_arg)

    # ---- Path B: D not a multiple of 128 -> flatten trailing dims so the lane
    # axis is S*D, then tile it in multiples of 128 (~target-sized chunks) and
    # tile batch so each grid step still moves a multi-MiB DMA.
    N = S * D
    x_flat = x.reshape(B, 1, N)
    pe_flat = pe[:S, :].reshape(1, N)

    if N * item > target and N >= 128:
        chunk = max(128, (min(N, target // item) // 128) * 128)
    else:
        chunk = N
    n_c = pl.cdiv(N, chunk)
    bt = min(B, max(1, target // max(1, chunk * item)))
    if n_c * pl.cdiv(B, bt) < 2 and B >= 2 and total_bytes >= (1 << 20):
        bt = -(-B // 2)
    n_b = pl.cdiv(B, bt)

    out = pl.pallas_call(
        _pe_add_kernel,
        out_shape=jax.ShapeDtypeStruct((B, 1, N), x.dtype),
        grid=(n_c, n_b),  # batch innermost -> pe chunk re-used across batch
        in_specs=[
            pl.BlockSpec((bt, 1, chunk), lambda c, b: (b, 0, c)),
            pl.BlockSpec((1, chunk), lambda c, b: (0, c)),
        ],
        out_specs=pl.BlockSpec((bt, 1, chunk), lambda c, b: (b, 0, c)),
        input_output_aliases=aliases,
        compiler_params=pltpu.CompilerParams(
            dimension_semantics=("parallel", "parallel"),
            vmem_limit_bytes=_VMEM_LIMIT_BYTES),
    )(x_flat, pe_flat)
    return out.reshape(B, S, D)


if __name__ == "__main__":
    key = jax.random.PRNGKey(0)

    # Primary smoke test (Path B: D=32 exercises the flattened lane-dense path).
    B, S, D = 2, 8, 32
    MAX_LEN = 64
    x = jax.random.normal(key, (B, S, D), dtype=jnp.float32)
    pe = make_positional_encoding(D, MAX_LEN)

    out = jax.block_until_ready(positional_encoding_forward(x, pe))
    ref = x + pe[:S, :][None, :, :]
    assert out.shape == (B, S, D)
    assert jnp.allclose(out, ref, atol=1e-6, rtol=1e-6)

    # Secondary check exercising the D % 128 == 0 (Path A, batch-tiled) path.
    B2, S2, D2 = 2, 16, 128
    x2 = jax.random.normal(jax.random.PRNGKey(0), (B2, S2, D2), dtype=jnp.float32)
    pe2 = make_positional_encoding(D2, MAX_LEN)
    out2 = jax.block_until_ready(positional_encoding_forward(x2, pe2))
    ref2 = x2 + pe2[:S2, :][None, :, :]
    assert out2.shape == (B2, S2, D2)
    assert jnp.allclose(out2, ref2, atol=1e-6, rtol=1e-6)

    print("KERNEL_OK")
</pallas_src>

<mosaic_0001>
module attributes {stable_mosaic.version = 11 : i64} {
  func.func @_pe_add_kernel(%arg0: i32, %arg1: i32, %arg2: memref<2x1x256xf32, #tpu.memory_space<vmem>>, %arg3: memref<1x256xf32, #tpu.memory_space<vmem>>, %arg4: memref<2x1x256xf32, #tpu.memory_space<vmem>>) attributes {dimension_semantics = [#tpu.dimension_semantics<parallel>, #tpu.dimension_semantics<parallel>], iteration_bounds = array<i64: 1, 1>, scalar_prefetch = 0 : i64, scratch_operands = 0 : i64, tpu.core_type = #tpu.core_type<tc>, window_params = [{transform_indices = @transform_0, window_bounds = array<i64: 2, 1, 256>}, {transform_indices = @transform_1, window_bounds = array<i64: 1, 256>}, {transform_indices = @transform_2, window_bounds = array<i64: 2, 1, 256>}]} {
    %c0 = arith.constant 0 : index
    %c0_0 = arith.constant 0 : index
    %c0_1 = arith.constant 0 : index
    %0 = vector.load %arg2[%c0, %c0_0, %c0_1] : memref<2x1x256xf32, #tpu.memory_space<vmem>>, vector<2x1x256xf32>
    %c0_2 = arith.constant 0 : index
    %c0_3 = arith.constant 0 : index
    %1 = vector.load %arg3[%c0_2, %c0_3] : memref<1x256xf32, #tpu.memory_space<vmem>>, vector<1x256xf32>
    %2 = vector.shape_cast %1 : vector<1x256xf32> to vector<1x1x256xf32>
    %3 = vector.broadcast %2 : vector<1x1x256xf32> to vector<2x1x256xf32>
    %4 = arith.addf %0, %3 : vector<2x1x256xf32>
    %c0_4 = arith.constant 0 : index
    %c0_5 = arith.constant 0 : index
    %c0_6 = arith.constant 0 : index
    %5 = vector.load %arg4[%c0_4, %c0_5, %c0_6] : memref<2x1x256xf32, #tpu.memory_space<vmem>>, vector<2x1x256xf32>
    tpu.vector_store %arg4[%c0_4, %c0_5, %c0_6], %4 {strides = array<i32>} : memref<2x1x256xf32, #tpu.memory_space<vmem>>, vector<2x1x256xf32>,
    return
  }
  func.func @transform_0(%arg0: i32, %arg1: i32) -> (i32, i32, i32) {
    %c0_i32 = arith.constant 0 : i32
    %c0_i32_0 = arith.constant 0 : i32
    return %arg1, %c0_i32, %arg0 : i32, i32, i32
  }
  func.func @transform_1(%arg0: i32, %arg1: i32) -> (i32, i32) {
    %c0_i32 = arith.constant 0 : i32
    %c0_i32_0 = arith.constant 0 : i32
    return %c0_i32, %arg0 : i32, i32
  }
  func.func @transform_2(%arg0: i32, %arg1: i32) -> (i32, i32, i32) {
    %c0_i32 = arith.constant 0 : i32
    %c0_i32_0 = arith.constant 0 : i32
    return %arg1, %c0_i32, %arg0 : i32, i32, i32
  }
}

</mosaic_0001>

<bundles_post_ra>
// kernel: tpu_custom_call.1
= control target key start
LH: loop header
LB: loop body
LE: loop exit
PB: predicated region body
PF: predicated region fallthrough
CT: control target
= control target key end

     0   :  { %7 = vsyncpa [#allocation3], 0  ;;  %s158_s0 = inlined_call_operand.hbm [shape: f32[2,1,256], index: 0, kind: input, shape index: {}]   ;;  %s159_s1 = inlined_call_operand.vmem [shape: f32[1,256], index: 1, kind: input, shape index: {}]   ;;  %s160_s2 = inlined_call_operand.hbm [shape: f32[2,1,256], index: 2, kind: output, shape index: {}]  }
   0x1   :  { %8 = vsyncpa [#allocation4], 0  ;;  %s106_s9 = smov [#allocation2]   ;;  %s58_s13 = scalar_lea.hbm %s158_s0, 64 }
   0x2   :  { %s14_s10 = sshll.u32 %s106_s9, 4  ;;  %p59_p0 = scmp.ne.s32.totalorder %s158_s0, %s58_s13  ;;  %s15_s10 = int_to_ptr.vmem [resolvable:$true] %s14_s10 }
   0x3   :  { %p62_p1 = scmp.lt.u32.totalorder %s58_s13, %s158_s0 }
   0x5   :  { %p64_p2 = pnand %p62_p1, %p59_p0 }
   0x7   :  { %67 = shalt.err (!%p64_p2)
}
   0x8   :  { %s68_s18 = scalar_lea.vmem %s15_s10, 64  ;;  %p73_p4 = scmp.lt.s32.totalorder %s15_s10, %s15_s10 }
   0x9   :  { %p69_p3 = scmp.ne.s32.totalorder %s15_s10, %s68_s18  ;;  %p74_p5 = scmp.lt.s32.totalorder %s68_s18, %s68_s18 }
   0xb   :  { %p75_p6 = por %p74_p5, %p73_p4 }
   0xd   :  { %p76_p7 = pnand %p75_p6, %p69_p3 }
   0xf   :  { %79 = shalt.err (!%p76_p7)
}
  0x10   :  { %s107_s19 = smov 32   ;;  %s108_s20 = smov 2  }
  0x11   :  { %20 = dma.hbm_to_vmem [thread:$0]  %s158_s0, 64, %s15_s10, [#allocation3], %s107_s19, %s107_s19, %s108_s20  }
  0x12   :  { %102 = dma.done.wait [#allocation3], 64  }
  0x13   :  { %103 = vsyncadd [#allocation3], 4294967232  ;;  %v31_v0 = vlaneseq  ;;  %s109_s23 = smov [#allocation5]   ;;  %v26_v1 = vld [vmem:[#allocation2] sm:$0x3] }
  0x14   :  { %s42_s24 = sshll.u32 %s109_s23, 4  ;;  %v28_v2 = vld [vmem:[%s159_s1] sm:$0x3]  ;;  %v27_v3 = vld [vmem:[#allocation2 + $0x2] sm:$0x3]  ;;  %s43_s24 = int_to_ptr.vmem [resolvable:$true] %s42_s24 }
  0x15   :  { %vm33_vm0 = vcmp.lt.s32.totalorder %v31_v0, 256  ;;  %v29_v4 = vadd.f32 %v28_v2, %v26_v1  ;;  %v30_v5 = vadd.f32 %v28_v2, %v27_v3  ;;  %s80_s27 = scalar_lea.vmem %s43_s24, 64  ;;  %p85_p9 = scmp.lt.s32.totalorder %s43_s24, %s43_s24 }
  0x16   :  { %p81_p8 = scmp.ne.s32.totalorder %s43_s24, %s80_s27  ;;  %p86_p10 = scmp.lt.s32.totalorder %s80_s27, %s80_s27 }
  0x17   :  { %35 = vst.msk [vmem:[#allocation5] sm:$0x3] %vm33_vm0, %v29_v4  ;;  %36 = vst.msk [vmem:[#allocation5 + $0x2] sm:$0x3] %vm33_vm0, %v30_v5 }
  0x18   :  { %p87_p11 = por %p86_p10, %p85_p9 }
  0x1a   :  { %p88_p12 = pnand %p87_p11, %p81_p8 }
  0x1c   :  { %91 = shalt.err (!%p88_p12)
}
  0x1d   :  { %s92_s29 = scalar_lea.hbm %s160_s2, 64 }
  0x1e   :  { %p93_p13 = scmp.ne.s32.totalorder %s160_s2, %s92_s29  ;;  %p96_p0 = scmp.lt.u32.totalorder %s92_s29, %s160_s2 }
  0x20   :  { %p98_p1 = pnand %p96_p0, %p93_p13 }
  0x22   :  { %101 = shalt.err (!%p98_p1)
}
  0x23   :  { %48 = dma.vmem_to_hbm [thread:$0]  %s43_s24, 64, %s160_s2, [#allocation4], %s107_s19, %s107_s19, %s108_s20  }
  0x24   :  { %104 = dma.done.wait [#allocation4], 64  }
  0x25   :  { %105 = vsyncadd [#allocation4], 4294967232 }
  0x26   :  { %52 = vsyncpa [#allocation3], 1 }
  0x27   :  { %53 = vsyncpa [#allocation4], 1 }

</bundles_post_ra>
